<compile_context>
chip_gen: v5e
topology: v5e:2x2
jax: 0.10.0
libtpu: 0.0.40
codegen_flags: <defaults>
</compile_context>

<pallas_src>
import jax
import jax.numpy as jnp
from jax import lax
from jax.experimental import pallas as pl
from jax.experimental.pallas import tpu as pltpu

INPUT_SIZE = 8
HIDDEN_SIZE = 32
MAXITER = 100
ATOL = 1e-8
RTOL = 1e-5


def rnn_deq_kernel(x_ref, wihT_ref, whhT_ref, bih_ref, bhh_ref, z_ref):
    # x_ref: (1, I), wihT_ref: (I, H), whhT_ref: (H, H), bih/bhh: (1, H), z_ref: (1, H)
    x = x_ref[...]
    whhT = whhT_ref[...]  # loaded once; closed over by the while_loop body

    # Input contribution is constant across iterations: W_ih @ x + b_ih + b_hh
    const = (
        jnp.dot(x, wihT_ref[...], preferred_element_type=jnp.float32)
        + bih_ref[...]
        + bhh_ref[...]
    )  # (1, H)

    z0 = jnp.zeros_like(const)
    wz0 = jnp.zeros_like(const)                      # z0 == 0  =>  z0 @ W_hh^T == 0
    it0 = jnp.array(0, jnp.int32)
    tol_sq0 = jnp.array(ATOL * ATOL, jnp.float32)    # rtol*||z0|| + atol == atol
    done0 = jnp.zeros((), dtype=jnp.bool_)

    def cond(carry):
        it, _, _, _, done = carry
        return jnp.logical_and(it < MAXITER, jnp.logical_not(done))

    def body(carry):
        it, z, wz, tol_sq, _ = carry
        # wz == z @ W_hh^T was computed in the previous iteration (overlapped
        # with that iteration's convergence check).
        z_new = jnp.tanh(const + wz)

        # Convergence test for THIS iteration (XLU lane reduce + scalar compare).
        diff = z_new - z
        diff_sq = jnp.sum(diff * diff)
        # ||z_new - z|| <= rtol*||z|| + atol   <=>   diff_sq <= tol_sq  (both >= 0)
        converged = diff_sq <= tol_sq

        # Work for the NEXT iteration, issued now so the MXU push and the EUP
        # sqrt overlap the reduce/compare above instead of extending the chain.
        wz_new = jnp.dot(z_new, whhT, preferred_element_type=jnp.float32)
        z_new_norm = jnp.sqrt(jnp.sum(z_new * z_new))
        next_tol = RTOL * z_new_norm + ATOL

        return (it + 1, z_new, wz_new, next_tol * next_tol, converged)

    # Matches the reference's update-then-break: the converged iteration's z_new is kept.
    _, z_final, _, _, _ = lax.while_loop(cond, body, (it0, z0, wz0, tol_sq0, done0))
    z_ref[...] = z_final


def deq_forward(x, w_ih, w_hh, b_ih, b_hh):
    """DEQ_Module(model).forward(x) with model = nn.RNNCell(I, H); x: (I,) -> z*: (H,)."""
    I = x.shape[0]
    H = w_hh.shape[0]
    x2 = x.reshape(1, I).astype(jnp.float32)
    wihT = w_ih.T.astype(jnp.float32)        # (I, H)
    whhT = w_hh.T.astype(jnp.float32)        # (H, H)
    bih2 = b_ih.reshape(1, H).astype(jnp.float32)
    bhh2 = b_hh.reshape(1, H).astype(jnp.float32)

    vmem = pl.BlockSpec(memory_space=pltpu.MemorySpace.VMEM)
    out = pl.pallas_call(
        rnn_deq_kernel,
        out_shape=jax.ShapeDtypeStruct((1, H), jnp.float32),
        in_specs=[vmem, vmem, vmem, vmem, vmem],
        out_specs=vmem,
    )(x2, wihT, whhT, bih2, bhh2)
    return out.reshape(H)


def deq_forward_ref(x, w_ih, w_hh, b_ih, b_hh):
    """Pure-JAX reference of the same fixed-point iteration (for correctness check)."""
    z = jnp.zeros((HIDDEN_SIZE,), jnp.float32)
    const = w_ih @ x + b_ih + b_hh
    for _ in range(MAXITER):
        z_new = jnp.tanh(const + w_hh @ z)
        converged = jnp.linalg.norm(z_new - z) <= RTOL * jnp.linalg.norm(z) + ATOL
        z = z_new
        if bool(converged):
            break
    return z


if __name__ == "__main__":
    key = jax.random.PRNGKey(0)
    kx, k1, k2, k3, k4 = jax.random.split(key, 5)

    # Deterministic parameter init mimicking nn.RNNCell: U(-1/sqrt(H), 1/sqrt(H))
    bound = 1.0 / jnp.sqrt(jnp.array(HIDDEN_SIZE, jnp.float32))
    w_ih = jax.random.uniform(k1, (HIDDEN_SIZE, INPUT_SIZE), jnp.float32, -bound, bound)
    w_hh = jax.random.uniform(k2, (HIDDEN_SIZE, HIDDEN_SIZE), jnp.float32, -bound, bound)
    b_ih = jax.random.uniform(k3, (HIDDEN_SIZE,), jnp.float32, -bound, bound)
    b_hh = jax.random.uniform(k4, (HIDDEN_SIZE,), jnp.float32, -bound, bound)

    x = jax.random.normal(kx, (INPUT_SIZE,), jnp.float32)

    z_star = deq_forward(x, w_ih, w_hh, b_ih, b_hh)
    z_star = jax.block_until_ready(z_star)

    z_ref = deq_forward_ref(x, w_ih, w_hh, b_ih, b_hh)
    assert z_star.shape == (HIDDEN_SIZE,)
    assert jnp.allclose(z_star, z_ref, atol=1e-5, rtol=1e-5), "mismatch vs reference"

    # TODO(synk): backward pass (CGS solve of the implicit-function linear system) is
    # autograd machinery, not part of the forward pass, and is not implemented here.
    print("KERNEL_OK")
</pallas_src>

<mosaic_0001>
module attributes {stable_mosaic.version = 11 : i64} {
  func.func @rnn_deq_kernel(%arg0: memref<1x8xf32, #tpu.memory_space<vmem>>, %arg1: memref<8x32xf32, #tpu.memory_space<vmem>>, %arg2: memref<32x32xf32, #tpu.memory_space<vmem>>, %arg3: memref<1x32xf32, #tpu.memory_space<vmem>>, %arg4: memref<1x32xf32, #tpu.memory_space<vmem>>, %arg5: memref<1x32xf32, #tpu.memory_space<vmem>>) attributes {dimension_semantics = [], scalar_prefetch = 0 : i64, scratch_operands = 0 : i64, tpu.core_type = #tpu.core_type<tc>} {
    %c0 = arith.constant 0 : index
    %c0_0 = arith.constant 0 : index
    %0 = vector.load %arg0[%c0, %c0_0] : memref<1x8xf32, #tpu.memory_space<vmem>>, vector<1x8xf32>
    %c0_1 = arith.constant 0 : index
    %c0_2 = arith.constant 0 : index
    %1 = vector.load %arg2[%c0_1, %c0_2] : memref<32x32xf32, #tpu.memory_space<vmem>>, vector<32x32xf32>
    %c0_3 = arith.constant 0 : index
    %c0_4 = arith.constant 0 : index
    %2 = vector.load %arg1[%c0_3, %c0_4] : memref<8x32xf32, #tpu.memory_space<vmem>>, vector<8x32xf32>
    %cst = arith.constant dense<0.000000e+00> : vector<1x32xf32>
    %3 = tpu.matmul %0, %2, %cst {dimension_numbers = #tpu.dot_dimension_numbers<[1], [0], [0], [1], [0, 0, 1, 1], [], []>} : vector<1x8xf32>, vector<8x32xf32>, vector<1x32xf32> -> vector<1x32xf32>
    %c0_5 = arith.constant 0 : index
    %c0_6 = arith.constant 0 : index
    %4 = vector.load %arg3[%c0_5, %c0_6] : memref<1x32xf32, #tpu.memory_space<vmem>>, vector<1x32xf32>
    %5 = arith.addf %3, %4 : vector<1x32xf32>
    %c0_7 = arith.constant 0 : index
    %c0_8 = arith.constant 0 : index
    %6 = vector.load %arg4[%c0_7, %c0_8] : memref<1x32xf32, #tpu.memory_space<vmem>>, vector<1x32xf32>
    %7 = arith.addf %5, %6 : vector<1x32xf32>
    %cst_9 = arith.constant 0.000000e+00 : f32
    %8 = vector.broadcast %cst_9 : f32 to vector<1x32xf32>
    %cst_10 = arith.constant 0.000000e+00 : f32
    %9 = vector.broadcast %cst_10 : f32 to vector<1x32xf32>
    %c0_i32 = arith.constant 0 : i32
    %cst_11 = arith.constant 1.000000e-16 : f32
    %false = arith.constant false
    %10:5 = scf.while (%arg6 = %c0_i32, %arg7 = %8, %arg8 = %9, %arg9 = %cst_11, %arg10 = %false) : (i32, vector<1x32xf32>, vector<1x32xf32>, f32, i1) -> (i32, vector<1x32xf32>, vector<1x32xf32>, f32, i1) {
      %c100_i32 = arith.constant 100 : i32
      %12 = arith.cmpi slt, %arg6, %c100_i32 : i32
      %true = arith.constant true
      %13 = arith.xori %arg10, %true : i1
      %14 = arith.andi %12, %13 : i1
      scf.condition(%14) %arg6, %arg7, %arg8, %arg9, %arg10 : i32, vector<1x32xf32>, vector<1x32xf32>, f32, i1
    } do {
    ^bb0(%arg6: i32, %arg7: vector<1x32xf32>, %arg8: vector<1x32xf32>, %arg9: f32, %arg10: i1):
      %12 = arith.addf %7, %arg8 : vector<1x32xf32>
      %13 = math.tanh %12 : vector<1x32xf32>
      %14 = arith.subf %13, %arg7 : vector<1x32xf32>
      %15 = arith.mulf %14, %14 : vector<1x32xf32>
      %16 = vector.shape_cast %15 : vector<1x32xf32> to vector<1x1x32xf32>
      %cst_14 = arith.constant dense<0.000000e+00> : vector<1xf32>
      %17 = vector.multi_reduction <add>, %16, %cst_14 [1, 2] : vector<1x1x32xf32> to vector<1xf32>
      %18 = vector.shape_cast %17 : vector<1xf32> to vector<1x1x1xf32>
      %19 = vector.extract %18[0, 0, 0] : f32 from vector<1x1x1xf32>
      %20 = arith.cmpf ole, %19, %arg9 : f32
      %cst_15 = arith.constant dense<0.000000e+00> : vector<1x32xf32>
      %21 = tpu.matmul %13, %1, %cst_15 {dimension_numbers = #tpu.dot_dimension_numbers<[1], [0], [0], [1], [0, 0, 1, 1], [], []>} : vector<1x32xf32>, vector<32x32xf32>, vector<1x32xf32> -> vector<1x32xf32>
      %22 = arith.mulf %13, %13 : vector<1x32xf32>
      %23 = vector.shape_cast %22 : vector<1x32xf32> to vector<1x1x32xf32>
      %cst_16 = arith.constant dense<0.000000e+00> : vector<1xf32>
      %24 = vector.multi_reduction <add>, %23, %cst_16 [1, 2] : vector<1x1x32xf32> to vector<1xf32>
      %25 = vector.shape_cast %24 : vector<1xf32> to vector<1x1x1xf32>
      %26 = vector.extract %25[0, 0, 0] : f32 from vector<1x1x1xf32>
      %27 = math.sqrt %26 : f32
      %cst_17 = arith.constant 9.99999974E-6 : f32
      %28 = arith.mulf %cst_17, %27 : f32
      %cst_18 = arith.constant 9.99999993E-9 : f32
      %29 = arith.addf %28, %cst_18 : f32
      %c1_i32 = arith.constant 1 : i32
      %30 = arith.addi %arg6, %c1_i32 : i32
      %31 = arith.mulf %29, %29 : f32
      scf.yield %30, %13, %21, %31, %20 : i32, vector<1x32xf32>, vector<1x32xf32>, f32, i1
    }
    %c0_12 = arith.constant 0 : index
    %c0_13 = arith.constant 0 : index
    %11 = vector.load %arg5[%c0_12, %c0_13] : memref<1x32xf32, #tpu.memory_space<vmem>>, vector<1x32xf32>
    tpu.vector_store %arg5[%c0_12, %c0_13], %10#1 {strides = array<i32>} : memref<1x32xf32, #tpu.memory_space<vmem>>, vector<1x32xf32>,
    return
  }
}

</mosaic_0001>

<bundles_post_ra>
// kernel: tpu_custom_call.1
= control target key start
LH: loop header
LB: loop body
LE: loop exit
PB: predicated region body
PF: predicated region fallthrough
CT: control target
= control target key end

     0   :  { %10 = vsyncpa [#allocation3], 0  ;;  %s503_s0 = inlined_call_operand.hbm [shape: f32[1,8], index: 0, kind: input, shape index: {}]   ;;  %s504_s1 = inlined_call_operand.hbm [shape: f32[8,32], index: 1, kind: input, shape index: {}]   ;;  %s505_s2 = inlined_call_operand.hbm [shape: f32[32,32], index: 2, kind: input, shape index: {}]   ;;  %s506_s3 = inlined_call_operand.vmem [shape: f32[1,32], index: 3, kind: input, shape index: {}]   ;;  %s507_s4 = inlined_call_operand.vmem [shape: f32[1,32], index: 4, kind: input, shape index: {}]   ;;  %s508_s5 = inlined_call_operand.hbm [shape: f32[1,32], index: 5, kind: output, shape index: {}]  }
   0x1   :  { %11 = vsyncpa [#allocation6], 0  ;;  %s29_s20 = sshll.u32 %s504_s1, 4  ;;  %s30_s20 = int_to_ptr.hbm [resolvable:$true] %s29_s20 }
   0x2   :  { %12 = vsyncpa [#allocation4], 0  ;;  %s399_s21 = smov [#allocation5]   ;;  %s18_s25 = sshll.u32 %s503_s0, 4  ;;  %s19_s25 = int_to_ptr.hbm [resolvable:$true] %s18_s25 }
   0x3   :  { %s31_s22 = sshll.u32 %s399_s21, 4  ;;  %s400_s26 = smov [#allocation2]   ;;  %s32_s22 = int_to_ptr.vmem [resolvable:$true] %s31_s22 }
   0x4   :  { %34 = dma.hbm_to_vmem [thread:$0]  %s30_s20, 128, %s32_s22, [#allocation6]  }
   0x5   :  { %s20_s27 = sshll.u32 %s400_s26, 4  ;;  %s39_s30 = sshll.u32 %s505_s2, 4  ;;  %s21_s27 = int_to_ptr.vmem [resolvable:$true] %s20_s27  ;;  %s40_s30 = int_to_ptr.hbm [resolvable:$true] %s39_s30 }
   0x6   :  { %23 = dma.hbm_to_vmem [thread:$0]  %s19_s25, 16, %s21_s27, [#allocation3]  }
   0x7   :  { %s401_s1 = smov [#allocation7]   ;;  %s402_s7 = smov 128  }
   0x8   :  { %s41_s6 = sshll.u32 %s401_s1, 4  ;;  %s403_s8 = smov 8   ;;  %s42_s6 = int_to_ptr.vmem [resolvable:$true] %s41_s6 }
   0x9   :  { %47 = dma.hbm_to_vmem [thread:$0]  %s40_s30, 512, %s42_s6, [#allocation6], %s402_s7, %s402_s7, %s403_s8  }
   0xa   :  { %377 = dma.done.wait [#allocation3], 16  }
   0xb   :  { %378 = vsyncadd [#allocation3], 4294967280 }
   0xc   :  { %379 = dma.done.wait [#allocation6], 640  }
   0xd   :  { %380 = vsyncadd [#allocation6], 4294966656  ;;  %v444_v0 = vld [vmem:[#allocation7] sm:$0xff]  ;;  %v446_v1 = vld [vmem:[#allocation7 + $0x8] sm:$0xff]  ;;  %vm71_vm0 = vcmask 64512   ;;  %v462_v11 = vmov 0.0  }
   0xe   :  { %v448_v2 = vld [vmem:[#allocation7 + $0x10] sm:$0xff]  ;;  %v450_v3 = vld [vmem:[#allocation7 + $0x18] sm:$0xff]  ;;  %s460_s11 = smov 1e-16   ;;  %v464_v12 = vmov 0.0   ;;  %s466_s12 = smov 0  }
   0xf   :  { %v69_v4 = vld [vmem:[#allocation5] sm:$0xff]  ;;  %v64_v5 = vld [vmem:[#allocation2] sm:$0x1] }
  0x10   :  { %90 = vmatpush.msra.mxu0 %v69_v4  ;;  %v70_v6 = vld [vmem:[%s506_s3] sm:$0x1] }
  0x11   :  { %215 = vmatmul.msk.f32.vlgmr.msra.gmra.mxu0 %vm71_vm0, %v64_v5  ;;  %v95_v8 = vld [vmem:[%s507_s4] sm:$0x1] }
  0x8e   :  { %v92_v7 = vpop.f32.mrf.mxu0 }
  0x8f   :  { %v93_v9 = vadd.f32 %v92_v7, %v70_v6 }
  0x91   :  { %v458_v10 = vadd.f32 %v95_v8, %v93_v9 }
  0x92 LB: > { %141 = vmatpush.msra.mxu0 %v450_v3  ;;  %vm113_vm1 = vcmask 253952   ;;  %vm125_vm2 = vcmask 261120   ;;  %s176_s3 = sadd.s32 1, %s397_s12   ;;  %s397_s12 = sphi %s466_s12, %s511_s12   ;;  %v393_v12 = vphi %v464_v12, %v510_v12   ;;  %v389_v11 = vphi %v462_v11, %v146_v11   ;;  %s385_s11 = sphi %s460_s11, %s509_s11  }
  0x93   : > { %v109_v13 = vadd.f32 %v389_v11, %v458_v10  ;;  %p103_p1 = scmp.lt.s32.totalorder %s176_s3, 100  ;;  %s511_s12 = smov %s176_s3 }
  0x94   : > { %142 = vmatpush.msra.mxu0 %v448_v2 }
  0x95   : > { %261 = vtanh.f32 %v109_v13 }
  0x96   : > { %143 = vmatpush.msra.mxu0 %v446_v1 }
  0x98   : > { %144 = vmatpush.msra.mxu0 %v444_v0 }
  0x9b   : > { %v262_v14 = vpop.eup %261  }
  0x9c   : > { %v111_v15 = vsub.f32 %v262_v14, %v393_v12  ;;  %v149_v18 = vmul.f32 %v262_v14, %v262_v14  ;;  %216 = vmatmul.msk.f32.vlgmr.msra.gmra.mxu0 %vm125_vm2, %v262_v14  ;;  %v510_v12 = vmov %v262_v14 }
  0x9e   : > { %v112_v16 = vmul.f32 %v111_v15, %v111_v15  ;;  %v150_v19 = vsel %vm113_vm1, %v149_v18, 0.0 }
  0xa0   : > { %v114_v17 = vsel %vm113_vm1, %v112_v16, 0.0 }
  0xa1   : > { %115 = vadd.xlane.f32.xlu0 %v114_v17 }
  0xa9   : > { %151 = vadd.xlane.f32.xlu0 %v150_v19 }
 0x114   : > { %v116_v20 = vpop.xlane.xlu0 %115 }
 0x115   : > { %v117_v21 = vrot.slane %v116_v20, 4 }
 0x117   : > { %v118_v22 = vadd.f32 %v117_v21, %v116_v20 }
 0x119   : > { %v119_v23 = vrot.slane %v118_v22, 2  ;;  %v146_v11 = vpop.f32.mrf.mxu0  }
 0x11b   : > { %v120_v24 = vadd.f32 %v119_v23, %v118_v22 }
 0x11c   : > { %v152_v25 = vpop.xlane.xlu0 %151 }
 0x11d   : > { %v153_v26 = vrot.slane %v152_v25, 4  ;;  %v121_v27 = vrot.slane %v120_v24, 1 }
 0x11f   : > { %v154_v28 = vadd.f32 %v153_v26, %v152_v25  ;;  %v122_v29 = vadd.f32 %v121_v27, %v120_v24 }
 0x121   : > { %v155_v30 = vrot.slane %v154_v28, 2  ;;  %217 = vpush %v122_v29 }
 0x123   : > { %v156_v31 = vadd.f32 %v155_v30, %v154_v28 }
 0x125   : > { %v157_v32 = vrot.slane %v156_v31, 1 }
 0x127   : > { %v158_v33 = vadd.f32 %v157_v32, %v156_v31 }
 0x129   : > { %219 = vpush %v158_v33 }
 0x152   : > { %s218_s4 = spop %217 }
 0x153   : > { %p124_p0 = scmp.le.f32.partialorder %s218_s4, %s385_s11 }
 0x155   : > { %p104_p2 = pneg %p124_p0 }
 0x157   : > { %p105_p3 = pnand %p104_p2, %p103_p1 }
 0x158   :  { %179 = vst.msk [vmem:[#allocation8] sm:$0x1] (%p105_p3), %vm113_vm1, %v262_v14  ;;  %s187_s20 = sshll.u32 (%p105_p3), %s508_s5, 4  ;;  %s404_s21 = smov (%p105_p3), [#allocation8]   ;;  %s188_s20 = int_to_ptr.hbm [resolvable:$true] %s187_s20 }
 0x159   :  { %s185_s22 = sshll.u32 (%p105_p3), %s404_s21, 4  ;;  %s186_s22 = int_to_ptr.vmem [resolvable:$true] %s185_s22 }
 0x15a   : > { %s220_s13 = spop %219 }
 0x15b   : > { %v160_v34 = vstv %s220_s13  ;;  %190 = dma.vmem_to_hbm [thread:$0]  (%p105_p3), %s186_s22, 16, %s188_s20, [#allocation4]  }
 0x15c   : > { %263 = vrsqrt.f32 %v160_v34  ;;  %vm168_vm3 = vcmp.eq.f32.partialorder %v160_v34, inf  ;;  %v171_v42 = vand.u32 2147483648, %v160_v34  ;;  %vm170_vm4 = vcmp.eq.f32.partialorder %v160_v34, 0.0 }
 0x162   : > { %v264_v35 = vpop.eup %263 }
 0x163   : > { %v162_v36 = vmul.f32 %v264_v35, %v160_v34 }
 0x165   : > { %v163_v37 = vmul.f32 %v264_v35, %v162_v36 }
 0x167   : > { %v164_v38 = vmul.f32 0.5, %v163_v37 }
 0x169   : > { %v165_v39 = vsub.f32 1.5, %v164_v38 }
 0x16b   : > { %v166_v40 = vmul.f32 %v264_v35, %v165_v39 }
 0x16d   : > { %v167_v41 = vmul.f32 %v166_v40, %v160_v34 }
 0x16f   : > { %v169_v43 = vsel %vm168_vm3, %v160_v34, %v167_v41 }
 0x170   : > { %v172_v44 = vsel %vm170_vm4, %v171_v42, %v169_v43 }
 0x171   : > { %221 = vpush %v172_v44 }
 0x1a2   : > { %s222_s14 = spop %221 }
 0x1a3   : > { %s174_s15 = smul.f32 1e-05, %s222_s14 }
 0x1a5   : > { %s175_s16 = sadd.f32 1e-08, %s174_s15  ;;  %108 = sbr.rel (!%p105_p3) target bundleno = 146 (0x92), region = 59 }
 0x1a7   : > { %s177_s17 = smul.f32 %s175_s16, %s175_s16  }
 0x1a9   : > { %s509_s11 = smov %s177_s17 }
 0x1aa   :  { %381 = dma.done.wait [#allocation4], 16  }
 0x1ab   :  { %382 = vsyncadd [#allocation4], 4294967280 }
 0x1ac   :  { %195 = vsyncpa [#allocation3], 1 }
 0x1ad   :  { %196 = vsyncpa [#allocation6], 1 }
 0x1ae   :  { %197 = vsyncpa [#allocation4], 1 }

</bundles_post_ra>
